<compile_context>
chip_gen: v7x
topology: tpu7x:2x2x1
jax: 0.10.0
libtpu: 0.0.40
codegen_flags: <defaults>
</compile_context>

<pallas_src>
import math

import jax
import jax.numpy as jnp
from jax.experimental import pallas as pl
from jax.experimental.pallas import tpu as pltpu

_LANES = 128
_MAX_TILE_ROWS = 2048          # measured roofline saturates by ~512-1024 rows
_VMEM_BLOCK_BUDGET = 24 * 1024 * 1024   # pipelined-block budget (double-buffered)
_VMEM_LIMIT_BYTES = 32 * 1024 * 1024    # <= default scoped on v6e/v7x; raises v5e


def _round_up(x, m):
    return ((x + m - 1) // m) * m


def _sublane_multiple(dtype):
    # f32 -> 8 sublanes, bf16 -> 16, int8/fp8 -> 32 (sub-32-bit packs along sublanes).
    return max(8, 32 // jnp.dtype(dtype).itemsize)


def _weighted_agg_kernel(w_ref, *refs):
    # w_ref: SMEM [N] f32 (resident across all grid steps).
    # refs = (x_0, ..., x_{N-1}, out), each a VMEM [tm, 128] block.
    *x_refs, o_ref = refs
    # Single fused expression: one vld per client + one vst per output vreg,
    # f32 accumulation held in vregs (no VMEM accumulator round trips).
    acc = x_refs[0][...].astype(jnp.float32) * w_ref[0]
    for n in range(1, len(x_refs)):
        acc = acc + x_refs[n][...].astype(jnp.float32) * w_ref[n]
    o_ref[...] = acc.astype(o_ref.dtype)


def _jnp_weighted_sum(x_list, w, out_dtype):
    acc = x_list[0].astype(jnp.float32) * w[0]
    for i in range(1, len(x_list)):
        acc = acc + x_list[i].astype(jnp.float32) * w[i]
    return acc.astype(out_dtype)


def _choose_tile_rows(rows, n_clients, in_itemsize, out_itemsize, sub):
    """Tile rows from a VMEM budget; keep >= 2 grid steps when possible."""
    if rows <= sub:
        return rows                                   # single full-extent block
    # Double-buffered per-row footprint: N input blocks + 1 output block.
    per_row = 2 * (n_clients * in_itemsize + out_itemsize) * _LANES
    tm = _VMEM_BLOCK_BUDGET // per_row
    tm = max((tm // sub) * sub, sub)
    tm = min(tm, _MAX_TILE_ROWS)
    tm = min(tm, (rows // sub) * sub)                  # never exceed the array extent
    # >= 2 grid steps: lets v7x shard the row axis across its 2 TensorCores
    # and gives the BlockSpec pipeline tiles to overlap.
    if pl.cdiv(rows, tm) < 2:
        tm = max(_round_up(pl.cdiv(rows, 2), sub), sub)
    return tm


def weighted_agg(x_list, agg_weights):
    """Pallas TPU implementation of WeightedAgg.forward: sum_i x_list[i] * w[i]."""
    n_clients = len(x_list)
    assert n_clients >= 1
    assert agg_weights.shape == (n_clients,)
    shape = x_list[0].shape
    in_dtype = x_list[0].dtype
    for x in x_list[1:]:
        assert x.shape == shape and x.dtype == in_dtype

    # Match PyTorch type promotion (x * float_param -> promoted dtype).
    out_dtype = jnp.result_type(in_dtype, agg_weights.dtype)
    w = agg_weights.astype(jnp.float32)

    n_elems = math.prod(shape)
    rows = n_elems // _LANES
    tail = n_elems - rows * _LANES

    if rows == 0:
        # Less than one lane row of data: not worth a kernel launch.
        return _jnp_weighted_sum(x_list, w, out_dtype)

    flats = [jnp.reshape(x, (-1,)) for x in x_list]
    n_main = rows * _LANES
    if tail == 0:
        # Zero-copy, lane-dense [rows, 128] view of each client.
        mains = [f.reshape(rows, _LANES) for f in flats]
    else:
        # TODO(synk): the prefix slice may materialize a copy for ragged sizes;
        # only the (< 128 element) tail is computed outside the kernel.
        mains = [jax.lax.slice(f, (0,), (n_main,)).reshape(rows, _LANES) for f in flats]

    in_itemsize = jnp.dtype(in_dtype).itemsize
    out_itemsize = jnp.dtype(out_dtype).itemsize
    sub = max(_sublane_multiple(in_dtype), _sublane_multiple(out_dtype))
    tm = _choose_tile_rows(rows, n_clients, in_itemsize, out_itemsize, sub)
    grid = (pl.cdiv(rows, tm),)

    cost = pl.CostEstimate(
        flops=2 * n_clients * n_main,
        transcendentals=0,
        bytes_accessed=n_main * (n_clients * in_itemsize + out_itemsize),
    )

    out_main = pl.pallas_call(
        _weighted_agg_kernel,
        out_shape=jax.ShapeDtypeStruct((rows, _LANES), out_dtype),
        grid=grid,
        in_specs=[
            # agg_weights: tiny, untiled, resident in SMEM across all steps.
            pl.BlockSpec(memory_space=pltpu.MemorySpace.SMEM),
        ]
        + [
            # each client: lane-dense [tm, 128] blocks tiled over the row axis.
            pl.BlockSpec((tm, _LANES), lambda i: (i, 0))
            for _ in range(n_clients)
        ],
        out_specs=pl.BlockSpec((tm, _LANES), lambda i: (i, 0)),
        compiler_params=pltpu.CompilerParams(
            dimension_semantics=("parallel",),   # megacore sharding on v7x
            vmem_limit_bytes=_VMEM_LIMIT_BYTES,
        ),
        cost_estimate=cost,
    )(w, *mains)

    out_flat = out_main.reshape(-1)
    if tail:
        tail_out = _jnp_weighted_sum([f[n_main:] for f in flats], w, out_dtype)
        out_flat = jnp.concatenate([out_flat, tail_out])
    return out_flat.reshape(shape)


def init_agg_weights(num_clients, dtype=jnp.float32):
    """Mirrors nn.Parameter(torch.ones(num_clients) / num_clients)."""
    return jnp.ones((num_clients,), dtype=dtype) / num_clients


if __name__ == "__main__":
    key = jax.random.PRNGKey(0)
    num_clients = 4
    shape = (2, 4, 16, 16)

    keys = jax.random.split(key, num_clients + 1)
    x_list = [
        jax.random.normal(keys[i], shape, dtype=jnp.float32)
        for i in range(num_clients)
    ]
    # Module init (ones/N) plus a deterministic perturbation so each client's
    # weight is distinct and the reduction is genuinely exercised.
    w = init_agg_weights(num_clients) + 0.1 * jax.random.normal(
        keys[-1], (num_clients,), dtype=jnp.float32
    )

    out = weighted_agg(x_list, w)
    out = jax.block_until_ready(out)

    # Pure-JAX reference mirroring the PyTorch loop.
    ref = x_list[0] * w[0]
    for i in range(1, num_clients):
        ref = ref + x_list[i] * w[i]

    assert out.shape == shape, (out.shape, shape)
    assert out.dtype == ref.dtype, (out.dtype, ref.dtype)
    assert jnp.allclose(out, ref, atol=1e-6, rtol=1e-6)

    print("KERNEL_OK")
</pallas_src>

<mosaic_0001>
module attributes {stable_mosaic.version = 11 : i64} {
  func.func @_weighted_agg_kernel(%arg0: i32, %arg1: memref<4xf32, #tpu.memory_space<smem>>, %arg2: memref<8x128xf32, #tpu.memory_space<vmem>>, %arg3: memref<8x128xf32, #tpu.memory_space<vmem>>, %arg4: memref<8x128xf32, #tpu.memory_space<vmem>>, %arg5: memref<8x128xf32, #tpu.memory_space<vmem>>, %arg6: memref<8x128xf32, #tpu.memory_space<vmem>>) attributes {dimension_semantics = [#tpu.dimension_semantics<parallel>], iteration_bounds = array<i64: 2>, scalar_prefetch = 0 : i64, scratch_operands = 0 : i64, tpu.core_type = #tpu.core_type<tc>, window_params = [{transform_indices = @transform_0, window_bounds = array<i64: 4>}, {transform_indices = @transform_1, window_bounds = array<i64: 8, 128>}, {transform_indices = @transform_2, window_bounds = array<i64: 8, 128>}, {transform_indices = @transform_3, window_bounds = array<i64: 8, 128>}, {transform_indices = @transform_4, window_bounds = array<i64: 8, 128>}, {transform_indices = @transform_5, window_bounds = array<i64: 8, 128>}]} {
    %c0 = arith.constant 0 : index
    %c0_0 = arith.constant 0 : index
    %0 = vector.load %arg2[%c0, %c0_0] : memref<8x128xf32, #tpu.memory_space<vmem>>, vector<8x128xf32>
    %c0_1 = arith.constant 0 : index
    %1 = memref.load %arg1[%c0_1] : memref<4xf32, #tpu.memory_space<smem>>
    %2 = vector.broadcast %1 : f32 to vector<8x128xf32>
    %3 = arith.mulf %0, %2 : vector<8x128xf32>
    %c0_2 = arith.constant 0 : index
    %c0_3 = arith.constant 0 : index
    %4 = vector.load %arg3[%c0_2, %c0_3] : memref<8x128xf32, #tpu.memory_space<vmem>>, vector<8x128xf32>
    %c1 = arith.constant 1 : index
    %5 = memref.load %arg1[%c1] : memref<4xf32, #tpu.memory_space<smem>>
    %6 = vector.broadcast %5 : f32 to vector<8x128xf32>
    %7 = arith.mulf %4, %6 : vector<8x128xf32>
    %8 = arith.addf %3, %7 : vector<8x128xf32>
    %c0_4 = arith.constant 0 : index
    %c0_5 = arith.constant 0 : index
    %9 = vector.load %arg4[%c0_4, %c0_5] : memref<8x128xf32, #tpu.memory_space<vmem>>, vector<8x128xf32>
    %c2 = arith.constant 2 : index
    %10 = memref.load %arg1[%c2] : memref<4xf32, #tpu.memory_space<smem>>
    %11 = vector.broadcast %10 : f32 to vector<8x128xf32>
    %12 = arith.mulf %9, %11 : vector<8x128xf32>
    %13 = arith.addf %8, %12 : vector<8x128xf32>
    %c0_6 = arith.constant 0 : index
    %c0_7 = arith.constant 0 : index
    %14 = vector.load %arg5[%c0_6, %c0_7] : memref<8x128xf32, #tpu.memory_space<vmem>>, vector<8x128xf32>
    %c3 = arith.constant 3 : index
    %15 = memref.load %arg1[%c3] : memref<4xf32, #tpu.memory_space<smem>>
    %16 = vector.broadcast %15 : f32 to vector<8x128xf32>
    %17 = arith.mulf %14, %16 : vector<8x128xf32>
    %18 = arith.addf %13, %17 : vector<8x128xf32>
    %c0_8 = arith.constant 0 : index
    %c0_9 = arith.constant 0 : index
    %19 = vector.load %arg6[%c0_8, %c0_9] : memref<8x128xf32, #tpu.memory_space<vmem>>, vector<8x128xf32>
    tpu.vector_store %arg6[%c0_8, %c0_9], %18 {strides = array<i32>} : memref<8x128xf32, #tpu.memory_space<vmem>>, vector<8x128xf32>,
    return
  }
  func.func @transform_0(%arg0: i32) -> i32 {
    %c0_i32 = arith.constant 0 : i32
    %c0_i32_0 = arith.constant 0 : i32
    return %c0_i32 : i32
  }
  func.func @transform_1(%arg0: i32) -> (i32, i32) {
    %c0_i32 = arith.constant 0 : i32
    %c0_i32_0 = arith.constant 0 : i32
    return %arg0, %c0_i32 : i32, i32
  }
  func.func @transform_2(%arg0: i32) -> (i32, i32) {
    %c0_i32 = arith.constant 0 : i32
    %c0_i32_0 = arith.constant 0 : i32
    return %arg0, %c0_i32 : i32, i32
  }
  func.func @transform_3(%arg0: i32) -> (i32, i32) {
    %c0_i32 = arith.constant 0 : i32
    %c0_i32_0 = arith.constant 0 : i32
    return %arg0, %c0_i32 : i32, i32
  }
  func.func @transform_4(%arg0: i32) -> (i32, i32) {
    %c0_i32 = arith.constant 0 : i32
    %c0_i32_0 = arith.constant 0 : i32
    return %arg0, %c0_i32 : i32, i32
  }
  func.func @transform_5(%arg0: i32) -> (i32, i32) {
    %c0_i32 = arith.constant 0 : i32
    %c0_i32_0 = arith.constant 0 : i32
    return %arg0, %c0_i32 : i32, i32
  }
}

</mosaic_0001>

<bundles_post_ra>
// kernel: tpu_custom_call.1
= control target key start
LH: loop header
LB: loop body
LE: loop exit
PB: predicated region body
PF: predicated region fallthrough
CT: control target
= control target key end

     0   :  { %s1198_s0 = inlined_call_operand.hbm [shape: f32[4], index: 0, kind: input, shape index: {}]   ;;  %s1199_s1 = inlined_call_operand.hbm [shape: f32[16,128], index: 1, kind: input, shape index: {}]   ;;  %s1200_s2 = inlined_call_operand.hbm [shape: f32[16,128], index: 2, kind: input, shape index: {}]   ;;  %s1201_s3 = inlined_call_operand.hbm [shape: f32[16,128], index: 3, kind: input, shape index: {}]   ;;  %s1202_s4 = inlined_call_operand.hbm [shape: f32[16,128], index: 4, kind: input, shape index: {}]   ;;  %s1203_s5 = inlined_call_operand.hbm [shape: f32[16,128], index: 5, kind: output, shape index: {}]  }
   0x1   :  { %1216 = sst [smem:[#allocation21_spill]] %s1200_s2 }
   0x2   :  { %10 = vsyncpa [#allocation5], 0 }
   0x3   :  { %11 = vsyncpa [#allocation3], 0 }
   0x4   :  { %13 = vsyncpa [#allocation3 + $0x1], 0 }
   0x5   :  { %14 = vsyncpa [#allocation8], 0 }
   0x6   :  { %16 = vsyncpa [#allocation8 + $0x1], 0 }
   0x7   :  { %17 = vsyncpa [#allocation11], 0 }
   0x8   :  { %19 = vsyncpa [#allocation11 + $0x1], 0 }
   0x9   :  { %20 = vsyncpa [#allocation4], 0 }
   0xa   :  { %22 = vsyncpa [#allocation4 + $0x1], 0  ;;  %s889_s18 = smov 0   ;;  %s891_s19 = smov 0  }
   0xb   :  { %s893_s20 = smov 0   ;;  %s895_s21 = smov 0  }
   0xc LB: > { %1217 = sst [smem:[#allocation18_spill]] %s847_s20  ;;  %s910_s22 = sadd.s32 1, %s851_s21   ;;  %s851_s21 = sphi %s895_s21, %s1241_s21   ;;  %s847_s20 = sphi %s893_s20, %s1243_s20   ;;  %s843_s19 = sphi %s891_s19, %s1245_s19   ;;  %s839_s18 = sphi %s889_s18, %s1244_s18  }
   0xd   : > { %1218 = sst [smem:[#allocation19_spill]] %s910_s22  ;;  %s56_s23 = sadd.s32 1, %s847_s20 }
   0xe   : > { %s53_s24 = ssub.s32 %s851_s21, %s910_s22  ;;  %p1204_p0 = scmp.ne.s32.totalorder %s847_s20, %s843_s19 }
   0xf   : > { %p54_p1 = scmp.eq.s32.totalorder %s53_s24, 0  ;;  %p64_p2 = scmp.eq.s32.totalorder %s851_s21, 0 }
  0x10   : > { %p604_p4 = scmp.lt.s32.totalorder %s851_s21, 2  ;;  %s927_s26 = sand.u32 1, %s847_s20  }
  0x11   : > { %s921_s25 = scalar_select %p54_p1, %s847_s20, %s56_s23  }
  0x12   : > { %p65_p5 = por %p64_p2, %p1204_p0  ;;  %s930_s27 = sshll.u32 %s927_s26, 3 }
  0x13   : > { %1219 = sst [smem:[#allocation20_spill]] %s921_s25  ;;  %s933_s28 = sshll.u32 %s851_s21, 7 }
  0x14   : > { %p935_p6 = pnand %p604_p4, %p65_p5  ;;  %s224_s30 = sand.u32 1, %s851_s21  }
  0x15   : > { %s1221_s2 = sld [smem:[#allocation21_spill]]  ;;  %s228_s9 = scalar_lea.vmem [#allocation7], %s930_s27 }
  0x16   : > { %s1220_s29 = scalar_select %p935_p6, 1, 0 }
  0x17   : > { %s235_s10 = sshll.u32 %s228_s9, 4  ;;  %s949_s11 = scalar_lea.sflag [#allocation8], %s224_s30  ;;  %s947_s10 = int_to_ptr.vmem [resolvable:$true] %s235_s10 }
  0x18   : > { %p955_p8 = pneg %p935_p6 }
  0x1b   : > { %s944_s8 = scalar_lea.hbm %s1221_s2, %s933_s28  ;;  %s645_s16 = scalar_lea.hbm %s1221_s2, 256 }
  0x1c   : > { %s640_s12 = scalar_lea.hbm %s944_s8, 128  ;;  %p646_p11 = scmp.lt.u32.totalorder %s944_s8, %s1221_s2 }
  0x1d   : > { %p641_p7 = scmp.ne.s32.totalorder %s944_s8, %s640_s12  ;;  %p647_p12 = scmp.lt.u32.totalorder %s645_s16, %s640_s12 }
  0x1e   : > { %p649_p1 = scmp.lt.u32.totalorder %s640_s12, %s944_s8 }
  0x1f   : > { %p643_p9 = pnand %p955_p8, %p641_p7  ;;  %p648_p13 = por %p647_p12, %p646_p11 }
  0x21   : > { %p644_p10 = pneg %p643_p9  ;;  %p650_p2 = por %p649_p1, %p648_p13 }
  0x23   : > { %p651_p4 = pnand %p650_p2, %p644_p10 }
  0x25   : > { %654 = shalt.err (!%p651_p4)
}
  0x26   : > { %s655_s24 = scalar_lea.vmem %s947_s10, 128  ;;  %s853_s30 = smov [#allocation7]  }
  0x27   : > { %p656_p5 = scmp.ne.s32.totalorder %s947_s10, %s655_s24  ;;  %s660_s6 = sshll.u32 %s853_s30, 4  ;;  %s661_s6 = int_to_ptr.vmem [resolvable:$false] %s660_s6 }
  0x28   : > { %s662_s7 = scalar_lea.vmem %s661_s6, 256  ;;  %p663_p3 = scmp.lt.s32.totalorder %s947_s10, %s661_s6 }
  0x29   : > { %p658_p7 = pnand %p656_p5, %p955_p8  ;;  %p664_p0 = scmp.lt.s32.totalorder %s662_s7, %s655_s24 }
  0x2b   : > { %p659_p9 = pneg %p658_p7  ;;  %p665_p11 = por %p664_p0, %p663_p3 }
  0x2d   : > { %p666_p12 = pnand %p665_p11, %p659_p9 }
  0x2f   : > { %669 = shalt.err (!%p666_p12)
}
  0x30   : > { %592 = dma.hbm_to_vmem [thread:$0]  (!%p935_p6), %s944_s8, 128, %s947_s10, %s949_s11  }
  0x31   : > { %s980_s9 = sadd.s32 4294967295, %s851_s21   ;;  %s542_s12 = sadd.s32 4294967294, %s851_s21  }
  0x32   : > { %p69_p0 = scmp.ne.s32.totalorder %s843_s19, %s839_s18  ;;  %p1205_p3 = scmp.eq.s32.totalorder %s980_s9, 0 }
  0x33   : > { %p171_p10 = scmp.eq.s32.totalorder %s980_s9, 1  ;;  %p177_p13 = scmp.eq.s32.totalorder %s542_s12, 1 }
  0x34   : > { %p989_p1 = por %p1205_p3, %p69_p0  ;;  %p543_p2 = scmp.ge.s32.totalorder %s851_s21, 1 }
  0x35   : > { %p1224_p4 = scmp.ne.s32.totalorder %s847_s20, %s843_s19  ;;  %p1001_p7 = por %p177_p13, %p69_p0 }
  0x36   : > { %s1223_s14 = scalar_select %p989_p1, 1, 0 }
  0x37   : > { %p997_p5 = por %p171_p10, %p1224_p4  ;;  %p184_p9 = scmp.lt.s32.totalorder %s851_s21, 3 }
  0x38   : > { %s1226_s10 = scalar_select %p1001_p7, 1, 0 }
  0x39   : > { %s1225_s8 = scalar_select %p997_p5, 1, 0 }
  0x3a   : > { %p1006_p11 = pnand %p543_p2, %p184_p9  ;;  %s1014_s23 = scalar_lea.hbm %s1199_s1, %s933_s28 }
  0x3b   : > { %s210_s24 = scalar_lea.vmem [#allocation6], %s930_s27  ;;  %s207_s6 = scalar_lea.sflag [#allocation3], %s927_s26 }
  0x3c   : > { %s1227_s15 = scalar_select %p1006_p11, 1, 0 }
  0x3d   : > { %s217_s30 = sshll.u32 %s210_s24, 4  ;;  %s670_s7 = scalar_lea.hbm %s1014_s23, 128  ;;  %s218_s30 = int_to_ptr.vmem [resolvable:$true] %s217_s30 }
  0x3e   : > { %p671_p0 = scmp.ne.s32.totalorder %s1014_s23, %s670_s7  ;;  %s675_s17 = scalar_lea.hbm %s1199_s1, 256 }
  0x3f   : > { %p676_p2 = scmp.lt.u32.totalorder %s1014_s23, %s1199_s1  ;;  %p677_p4 = scmp.lt.u32.totalorder %s675_s17, %s670_s7 }
  0x40   : > { %p673_p10 = pnand %p671_p0, %p955_p8  ;;  %p679_p3 = scmp.lt.u32.totalorder %s670_s7, %s1014_s23 }
  0x41   : > { %p678_p9 = por %p677_p4, %p676_p2 }
  0x42   : > { %p674_p13 = pneg %p673_p10 }
  0x43   : > { %p680_p7 = por %p679_p3, %p678_p9 }
  0x45   : > { %p681_p12 = pnand %p680_p7, %p674_p13 }
  0x47   : > { %684 = shalt.err (!%p681_p12)
}
  0x48   : > { %s685_s24 = scalar_lea.vmem %s218_s30, 128  ;;  %s854_s20 = smov [#allocation6]  }
  0x49   : > { %p686_p5 = scmp.ne.s32.totalorder %s218_s30, %s685_s24  ;;  %s690_s22 = sshll.u32 %s854_s20, 4  ;;  %s691_s22 = int_to_ptr.vmem [resolvable:$false] %s690_s22 }
  0x4a   : > { %s692_s12 = scalar_lea.vmem %s691_s22, 256  ;;  %p693_p1 = scmp.lt.s32.totalorder %s218_s30, %s691_s22 }
  0x4b   : > { %p688_p0 = pnand %p686_p5, %p955_p8  ;;  %p694_p11 = scmp.lt.s32.totalorder %s692_s12, %s685_s24 }
  0x4d   : > { %p689_p10 = pneg %p688_p0  ;;  %p695_p6 = por %p694_p11, %p693_p1 }
  0x4f   : > { %p696_p2 = pnand %p695_p6, %p689_p10 }
  0x51   : > { %699 = shalt.err (!%p696_p2)
}
  0x52   : > { %p1228_p4 = scmp.ne.s32.totalorder %s1220_s29, 0  ;;  %p1229_p3 = scmp.eq.s32.totalorder %s980_s9, 0 }
  0x53   : > { %p1230_p5 = scmp.ne.s32.totalorder %s1227_s15, 0  ;;  %s1050_s25 = scalar_lea.hbm %s1201_s3, %s933_s28 }
  0x54   : > { %589 = dma.hbm_to_vmem [thread:$0]  (!%p1228_p4), %s1014_s23, 128, %s218_s30, %s207_s6  }
  0x55   : > { %p1231_p7 = pneg %p1230_p5  ;;  %s246_s7 = scalar_lea.vmem [#allocation9], %s930_s27 }
  0x56   : > { %s253_s16 = sshll.u32 %s246_s7, 4  ;;  %s700_s23 = scalar_lea.hbm %s1198_s0, 16  ;;  %s1053_s16 = int_to_ptr.vmem [resolvable:$true] %s253_s16 }
  0x57   : > { %p1042_p12 = pnand %p1231_p7, %p1229_p3  ;;  %p701_p6 = scmp.ne.s32.totalorder %s1198_s0, %s700_s23 }
  0x58   : > { %p707_p9 = scmp.lt.u32.totalorder %s700_s23, %s1198_s0 }
  0x59   : > { %p702_p1 = pneg %p1042_p12 }
  0x5b   : > { %p703_p11 = pnand %p702_p1, %p701_p6 }
  0x5d   : > { %p704_p13 = pneg %p703_p11 }
  0x5f   : > { %p709_p0 = pnand %p707_p9, %p704_p13 }
  0x61   : > { %712 = shalt.err (!%p709_p0)
}
  0x62   : > { %s855_s22 = smov [#allocation2]   ;;  %s713_s24 = scalar_lea.hbm %s1050_s25, 128 }
  0x63   : > { %585 = dma.hbm_to_smem (!%p1042_p12), %s1198_s0, 16, %s855_s22, [#allocation5]  }
  0x64   : > { %p714_p10 = scmp.ne.s32.totalorder %s1050_s25, %s713_s24  ;;  %s718_s6 = scalar_lea.hbm %s1201_s3, 256 }
  0x65   : > { %p719_p7 = scmp.lt.u32.totalorder %s1050_s25, %s1201_s3  ;;  %p720_p6 = scmp.lt.u32.totalorder %s718_s6, %s713_s24 }
  0x66   : > { %p716_p2 = pnand %p714_p10, %p955_p8  ;;  %p722_p11 = scmp.lt.u32.totalorder %s713_s24, %s1050_s25 }
  0x67   : > { %p721_p1 = por %p720_p6, %p719_p7 }
  0x68   : > { %p717_p3 = pneg %p716_p2 }
  0x69   : > { %p723_p13 = por %p722_p11, %p721_p1 }
  0x6b   : > { %p724_p9 = pnand %p723_p13, %p717_p3 }
  0x6d   : > { %727 = shalt.err (!%p724_p9)
}
  0x6e   : > { %s728_s20 = scalar_lea.vmem %s1053_s16, 128  ;;  %s856_s22 = smov [#allocation9]  }
  0x6f   : > { %p729_p12 = scmp.ne.s32.totalorder %s1053_s16, %s728_s20  ;;  %s733_s7 = sshll.u32 %s856_s22, 4  ;;  %s734_s7 = int_to_ptr.vmem [resolvable:$false] %s733_s7 }
  0x70   : > { %s735_s17 = scalar_lea.vmem %s734_s7, 256  ;;  %p736_p2 = scmp.lt.s32.totalorder %s1053_s16, %s734_s7 }
  0x71   : > { %p731_p0 = pnand %p729_p12, %p955_p8  ;;  %p737_p5 = scmp.lt.s32.totalorder %s735_s17, %s728_s20 }
  0x73   : > { %p732_p10 = pneg %p731_p0  ;;  %p738_p7 = por %p737_p5, %p736_p2 }
  0x75   : > { %p739_p6 = pnand %p738_p7, %p732_p10 }
  0x77   : > { %742 = shalt.err (!%p739_p6)
}
  0x78   : > { %595 = dma.hbm_to_vmem [thread:$0]  (!%p1228_p4), %s1050_s25, 128, %s1053_s16, %s949_s11  }
  0x79   : > { %s1097_s30 = scalar_lea.hbm %s1202_s4, %s933_s28  ;;  %s264_s6 = scalar_lea.vmem [#allocation10], %s930_s27 }
  0x7a   : > { %s271_s12 = sshll.u32 %s264_s6, 4  ;;  %s261_s2 = scalar_lea.sflag [#allocation11], %s927_s26  ;;  %s272_s12 = int_to_ptr.vmem [resolvable:$true] %s271_s12 }
  0x7b   : > { %s743_s20 = scalar_lea.hbm %s1097_s30, 128  ;;  %s748_s25 = scalar_lea.hbm %s1202_s4, 256 }
  0x7c   : > { %p744_p5 = scmp.ne.s32.totalorder %s1097_s30, %s743_s20  ;;  %p749_p11 = scmp.lt.u32.totalorder %s1097_s30, %s1202_s4 }
  0x7d   : > { %p750_p13 = scmp.lt.u32.totalorder %s748_s25, %s743_s20  ;;  %p752_p12 = scmp.lt.u32.totalorder %s743_s20, %s1097_s30 }
  0x7e   : > { %p746_p3 = pnand %p744_p5, %p955_p8 }
  0x7f   : > { %p751_p9 = por %p750_p13, %p749_p11 }
  0x80   : > { %p747_p1 = pneg %p746_p3 }
  0x81   : > { %p753_p0 = por %p752_p12, %p751_p9 }
  0x83   : > { %p754_p10 = pnand %p753_p0, %p747_p1 }
  0x85   : > { %757 = shalt.err (!%p754_p10)
}
  0x86   : > { %s758_s26 = scalar_lea.vmem %s272_s12, 128  ;;  %s857_s27 = smov [#allocation10]  }
  0x87   : > { %p759_p2 = scmp.ne.s32.totalorder %s272_s12, %s758_s26  ;;  %s763_s7 = sshll.u32 %s857_s27, 4  ;;  %s764_s7 = int_to_ptr.vmem [resolvable:$false] %s763_s7 }
  0x88   : > { %s765_s17 = scalar_lea.vmem %s764_s7, 256  ;;  %p766_p5 = scmp.lt.s32.totalorder %s272_s12, %s764_s7 }
  0x89   : > { %p761_p7 = pnand %p759_p2, %p955_p8  ;;  %p767_p3 = scmp.lt.s32.totalorder %s765_s17, %s758_s26 }
  0x8b   : > { %p762_p6 = pneg %p761_p7  ;;  %p768_p4 = por %p767_p3, %p766_p5 }
  0x8d   : > { %p769_p11 = pnand %p768_p4, %p762_p6 }
  0x8f   : > { %772 = shalt.err (!%p769_p11)
}
  0x90   : > { %p1233_p13 = scmp.ne.s32.totalorder %s1220_s29, 0  ;;  %p1234_p1 = scmp.ne.s32.totalorder %s1227_s15, 0 }
  0x91   : > { %p1235_p9 = scmp.eq.s32.totalorder (!%p1234_p1), %s980_s9, 0 }
  0x92   : > { %598 = dma.hbm_to_vmem [thread:$0]  (!%p1233_p13), %s1097_s30, 128, %s272_s12, %s261_s2  }
  0x93   : > { %280 = sbr.rel (%p1234_p1) target bundleno = 196 (0xc4), region = 40 }
  0x9a   : > { %818 = dma.done.wait (%p1235_p9), [#allocation5], 16   ;;  %p1236_p8 = pmov %p1235_p9 }
  0x9b   : > { %s1125_s13 = sand.u32 1, %s843_s19   ;;  %p1237_p4 = scmp.ne.s32.totalorder %s1223_s14, 0 }
  0x9c   : > { %820 = vsyncadd (%p1236_p8), [#allocation5], 4294967280  ;;  %s1128_s24 = sshll.u32 %s1125_s13, 3  ;;  %s287_s29 = scalar_lea.sflag [#allocation3], %s1125_s13 }
  0x9d   : > { %s290_s23 = scalar_lea.vmem [#allocation6], %s1128_s24 }
  0x9e   : > { %822 = dma.done.wait (%p1237_p4), %s287_s29, 128  }
  0x9f   : > { %824 = vsyncadd (%p1237_p4), %s287_s29, 4294967168  ;;  %s295_s15 = sand.u32 1, %s980_s9   ;;  %s299_s6 = scalar_lea.vmem [#allocation7], %s1128_s24 }
  0xa0   : > { %s296_s30 = scalar_lea.sflag [#allocation8], %s295_s15 }
  0xa1   : > { %826 = dma.done.wait (%p1237_p4), %s296_s30, 256  }
  0xa2   : > { %828 = vsyncadd (%p1237_p4), %s296_s30, 4294967040  ;;  %s308_s12 = scalar_lea.vmem [#allocation9], %s1128_s24  ;;  %s314_s2 = scalar_lea.sflag [#allocation11], %s1125_s13 }
  0xa3   : > { %s317_s20 = scalar_lea.vmem [#allocation10], %s1128_s24 }
  0xa4   : > { %830 = dma.done.wait (%p1237_p4), %s314_s2, 128  }
  0xa5   : > { %832 = vsyncadd (%p1237_p4), %s314_s2, 4294967168 }
  0xa6   : > { %322 = sfence }
  0xa7   : > { %s361_s22 = sld [smem:[#allocation2]]  ;;  %s561_s11 = sld [smem:[#allocation2 + $0x1]]  ;;  %v360_v0 = vld [vmem:[%s290_s23] sm:$0xff]  ;;  %v364_v1 = vld [vmem:[%s299_s6] sm:$0xff] }
  0xa8   : > { %s562_s25 = sld [smem:[#allocation2 + $0x2]]  ;;  %s563_s16 = sld [smem:[#allocation2 + $0x3]]  ;;  %v369_v2 = vld [vmem:[%s308_s12] sm:$0xff]  ;;  %v374_v7 = vld [vmem:[%s317_s20] sm:$0xff] }
  0xa9   : > { %s359_s14 = scalar_lea.vmem [#allocation12], %s1128_s24  ;;  %s565_s26 = sshll.u32 %s980_s9, 7 }
  0xaa   : > { %s394_s28 = sshll.u32 %s359_s14, 4  ;;  %s1156_s17 = scalar_lea.hbm %s1203_s5, %s565_s26  ;;  %s1151_s28 = int_to_ptr.vmem [resolvable:$true] %s394_s28 }
  0xab   : > { %s381_s29 = scalar_lea.sflag [#allocation4], %s1125_s13  ;;  %s773_s23 = scalar_lea.vmem %s1151_s28, 128 }
  0xac   : > { %p774_p12 = scmp.ne.s32.totalorder %s1151_s28, %s773_s23  ;;  %p1238_p0 = scmp.ne.s32.totalorder %s1225_s8, 0 }
  0xad   : > { %v362_v3 = vstv %s361_s22  ;;  %v366_v5 = vstv %s561_s11  ;;  %s858_s9 = smov [#allocation12]  }
  0xae   : > { %v363_v4 = vmul.f32 %v362_v3, %v360_v0  ;;  %v371_v6 = vstv %s562_s25  ;;  %v367_v8 = vmul.f32 %v366_v5, %v364_v1  ;;  %v376_v10 = vstv %s563_s16  ;;  %p775_p10 = pnand %p774_p12, %p1238_p0  ;;  %s777_s24 = sshll.u32 %s858_s9, 4  ;;  %s778_s24 = int_to_ptr.vmem [resolvable:$false] %s777_s24 }
  0xaf   : > { %v372_v9 = vmul.f32 %v371_v6, %v369_v2  ;;  %v377_v12 = vmul.f32 %v376_v10, %v374_v7  ;;  %s779_s15 = scalar_lea.vmem %s778_s24, 256  ;;  %p780_p7 = scmp.lt.s32.totalorder %s1151_s28, %s778_s24 }
  0xb0   : > { %v368_v11 = vadd.f32 %v367_v8, %v363_v4  ;;  %p776_p2 = pneg %p775_p10  ;;  %p781_p6 = scmp.lt.s32.totalorder %s779_s15, %s773_s23 }
  0xb2   : > { %v373_v13 = vadd.f32 %v372_v9, %v368_v11  ;;  %p782_p5 = por %p781_p6, %p780_p7 }
  0xb4   : > { %v378_v14 = vadd.f32 %v377_v12, %v373_v13  ;;  %p783_p3 = pnand %p782_p5, %p776_p2 }
  0xb6   : > { %379 = vst [vmem:[%s359_s14] sm:$0xff] %v378_v14 }
  0xb7   : > { %786 = shalt.err (!%p783_p3)
}
  0xb8   : > { %s787_s13 = scalar_lea.hbm %s1156_s17, 128  ;;  %s791_s12 = scalar_lea.hbm %s1203_s5, 256 }
  0xb9   : > { %p788_p11 = scmp.ne.s32.totalorder %s1156_s17, %s787_s13  ;;  %p792_p9 = scmp.lt.u32.totalorder %s1156_s17, %s1203_s5 }
  0xba   : > { %p793_p8 = scmp.lt.u32.totalorder %s791_s12, %s787_s13  ;;  %p795_p12 = scmp.lt.u32.totalorder %s787_s13, %s1156_s17 }
  0xbb   : > { %p789_p13 = pnand %p788_p11, %p1238_p0 }
  0xbc   : > { %p794_p4 = por %p793_p8, %p792_p9 }
  0xbd   : > { %p790_p1 = pneg %p789_p13 }
  0xbe   : > { %p796_p10 = por %p795_p12, %p794_p4 }
  0xc0   : > { %p797_p2 = pnand %p796_p10, %p790_p1 }
  0xc2   : > { %800 = shalt.err (!%p797_p2)
}
  0xc3   : > { %580 = dma.vmem_to_hbm [thread:$0]  (%p1238_p0), %s1151_s28, 128, %s1156_s17, %s381_s29  }
  0xc4 PF: > { %s406_s22 = sand.u32 1, %s839_s18   ;;  %p1239_p7 = scmp.ne.s32.totalorder %s1226_s10, 0 }
  0xc5   : > { %p1240_p6 = scmp.ge.s32.totalorder %s851_s21, 2  ;;  %s407_s11 = scalar_lea.sflag [#allocation4], %s406_s22 }
  0xc7   : > { %p600_p5 = pnand %p1240_p6, %p1239_p7 }
  0xc9   : > { %834 = dma.done.wait (!%p600_p5), %s407_s11, 128  }
  0xca   : > { %836 = vsyncadd (!%p600_p5), %s407_s11, 4294967168  ;;  %s1241_s21 = sld [smem:[#allocation19_spill]]  ;;  %s1242_s25 = sld [smem:[#allocation18_spill]] }
  0xcb   : > { %s1243_s20 = sld [smem:[#allocation20_spill]]  ;;  %s1244_s18 = smov %s843_s19 }
  0xd0   : > { %p25_p3 = scmp.ge.s32.totalorder %s1241_s21, 4   ;;  %s1245_s19 = smov %s1242_s25 }
  0xd2   :  { %27 = sbr.rel (!%p25_p3) target bundleno = 12 (0xc), region = 127 }
  0xd9   :  { %412 = vsyncpa [#allocation3], 1 }
  0xda   :  { %414 = vsyncpa [#allocation3 + $0x1], 1 }
  0xdb   :  { %415 = vsyncpa [#allocation8], 1 }
  0xdc   :  { %417 = vsyncpa [#allocation8 + $0x1], 1 }
  0xdd   :  { %418 = vsyncpa [#allocation11], 1 }
  0xde   :  { %420 = vsyncpa [#allocation11 + $0x1], 1 }
  0xdf   :  { %421 = vsyncpa [#allocation4], 1 }
  0xe0   :  { %423 = vsyncpa [#allocation4 + $0x1], 1 }
  0xe1   :  { %424 = vsyncpa [#allocation5], 1 }
  0xe2   :  { %426 = vsyncpa [#allocation5 + $0x1], 1 }

</bundles_post_ra>
